<compile_context>
chip_gen: v7x
topology: tpu7x:2x2x1
jax: 0.10.0
libtpu: 0.0.40
codegen_flags: <defaults>
</compile_context>

<pallas_src>
import functools

import jax
import jax.numpy as jnp
from jax.experimental import pallas as pl
from jax.experimental.pallas import tpu as pltpu


def _nce_block_sum_kernel(x_ref, o_ref, *, batch_size, block_rows):
    """x_ref: [TB, K] logits (native dtype); o_ref: [1, 8, 128] f32 partial sum."""
    i = pl.program_id(0)

    xin = x_ref[...]                                            # native dtype
    # Row max on the native dtype (uses bf16 VALU on v6e/v7x, exact for max),
    # widen only for the exp/log/accumulate passes.
    m = jnp.max(xin, axis=-1, keepdims=True).astype(jnp.float32)      # [TB, 1]
    x = xin.astype(jnp.float32)                                        # [TB, K]
    lse = jnp.log(jnp.sum(jnp.exp(x - m), axis=-1, keepdims=True)) + m  # [TB, 1]
    row_loss = lse - x[:, 0:1]                                          # [TB, 1]

    # Mask rows past the end of the batch (ragged last block): garbage rows may
    # hold inf/NaN after exp/log, so they must be zeroed before the reduction.
    rows_left = batch_size - i * block_rows
    row_ids = jax.lax.broadcasted_iota(jnp.int32, (block_rows, 1), 0)
    row_loss = jnp.where(row_ids < rows_left, row_loss, 0.0)

    psum = jnp.sum(row_loss)                                   # scalar f32
    # Lane-dense (1, 8, 128) store; wrapper reads element [:, 0, 0].
    o_ref[...] = jnp.full(o_ref.shape, psum, dtype=jnp.float32)


def _round_up(v, m):
    return (v + m - 1) // m * m


def _vmem_capacity_bytes():
    """Physical VMEM per TensorCore; conservative 64 MiB (v7x) fallback."""
    try:
        cap = int(pltpu.get_tpu_info().vmem_capacity_bytes)
        if cap > 0:
            return cap
    except Exception:
        pass
    return 64 * 1024 * 1024


def _vmem_plan(B, K, itemsize):
    """Pick (block_rows, vmem_limit_bytes) from the device's VMEM capacity."""
    cap = _vmem_capacity_bytes()
    # Scoped VMEM limit we ask Mosaic for (leave headroom under physical cap).
    vmem_limit = min((cap * 3) // 4, 96 * 1024 * 1024)
    # Target footprint for the kernel's buffers (inputs are double-buffered).
    budget = (vmem_limit * 2) // 3

    k_pad = _round_up(K, 128)
    # Per block row: 2 double-buffered native-dtype input copies + ~2 f32
    # temporaries (the widened tile and exp(x - m)).  This keeps v7x (64 MiB
    # VMEM) safe even for bf16 inputs that triple in size when widened.
    bytes_per_row = k_pad * (2 * itemsize + 8)
    tb = max(8, (budget // bytes_per_row) // 8 * 8)

    # Keep the grid multi-step so a 2-TensorCore chip (v7x) can split the rows.
    if B >= 16:
        tb = min(tb, _round_up(-(-B // 2), 8))
    tb = min(tb, _round_up(B, 8))
    return tb, vmem_limit


def nce_softmax_loss(x, *, block_rows=None, core_parallel=False):
    """x: [bsz, K, 1] or [bsz, K] logits (f32 or bf16). Returns scalar f32 loss."""
    if x.ndim == 3 and x.shape[-1] == 1:
        x2d = x[..., 0]                       # squeeze only the trailing singleton
    elif x.ndim == 2:
        x2d = x
    else:
        raise ValueError(f"expected [bsz, K, 1] or [bsz, K] logits, got {x.shape}")
    B, K = x2d.shape

    tb, vmem_limit = _vmem_plan(B, K, x2d.dtype.itemsize)
    if block_rows is not None:
        tb = block_rows
    grid_b = pl.cdiv(B, tb)

    # Default PARALLEL is safe on every generation; CORE_PARALLEL is the lever
    # that actually splits the row axis across the 2 TensorCores on v7x.
    sem = pltpu.CORE_PARALLEL if core_parallel else pltpu.PARALLEL

    # TODO(synk): on v7x, sweep pipeline_mode=pl.Buffered(3) on the input spec
    # once the binding slot (HBM vs EUP/VALU) is confirmed from a bundle dump.
    partial_sums = pl.pallas_call(
        functools.partial(_nce_block_sum_kernel, batch_size=B, block_rows=tb),
        out_shape=jax.ShapeDtypeStruct((grid_b, 8, 128), jnp.float32),
        grid=(grid_b,),
        in_specs=[pl.BlockSpec((tb, K), lambda i: (i, 0))],
        out_specs=pl.BlockSpec((1, 8, 128), lambda i: (i, 0, 0)),
        compiler_params=pltpu.CompilerParams(
            dimension_semantics=(sem,),
            vmem_limit_bytes=int(vmem_limit)),
    )(x2d)

    # Tiny epilogue: sum `grid_b` partial sums; mean folded into a static multiply.
    return jnp.sum(partial_sums[:, 0, 0]) * (1.0 / B)


def nce_softmax_loss_ref(x):
    """Pure-JAX reference (CrossEntropyLoss with all-zero labels)."""
    x2d = x[..., 0] if (x.ndim == 3 and x.shape[-1] == 1) else x
    x2d = x2d.astype(jnp.float32)
    lse = jax.scipy.special.logsumexp(x2d, axis=-1)
    return jnp.mean(lse - x2d[:, 0])


if __name__ == "__main__":
    # f32 path, shapes matching the module's NCE use: [bsz, 1 + num_negatives, 1]
    key = jax.random.PRNGKey(0)
    bsz, num_neg = 8, 32
    x = jax.random.normal(key, (bsz, 1 + num_neg, 1), dtype=jnp.float32)

    loss = nce_softmax_loss(x)
    jax.block_until_ready(loss)
    ref = nce_softmax_loss_ref(x)
    assert jnp.allclose(loss, ref, atol=1e-5, rtol=1e-5), (loss, ref)

    # bf16 ingestion path + multi-step grid + ragged last block (B=18, tb=16).
    x_bf16 = jax.random.normal(
        jax.random.PRNGKey(1), (18, 65, 1), dtype=jnp.float32).astype(jnp.bfloat16)
    loss_bf16 = nce_softmax_loss(x_bf16)
    jax.block_until_ready(loss_bf16)
    ref_bf16 = nce_softmax_loss_ref(x_bf16)
    assert jnp.allclose(loss_bf16, ref_bf16, atol=1e-4, rtol=1e-4), (loss_bf16, ref_bf16)

    print("KERNEL_OK")
</pallas_src>

<mosaic_0001>
module attributes {stable_mosaic.version = 11 : i64} {
  func.func @_nce_block_sum_kernel(%arg0: i32, %arg1: memref<8x33xf32, #tpu.memory_space<vmem>>, %arg2: memref<1x8x128xf32, #tpu.memory_space<vmem>>) attributes {dimension_semantics = [#tpu.dimension_semantics<parallel>], iteration_bounds = array<i64: 1>, scalar_prefetch = 0 : i64, scratch_operands = 0 : i64, tpu.core_type = #tpu.core_type<tc>, window_params = [{transform_indices = @transform_0, window_bounds = array<i64: 8, 33>}, {transform_indices = @transform_1, window_bounds = array<i64: 1, 8, 128>}]} {
    %c0 = arith.constant 0 : index
    %c0_0 = arith.constant 0 : index
    %0 = vector.load %arg1[%c0, %c0_0] : memref<8x33xf32, #tpu.memory_space<vmem>>, vector<8x33xf32>
    %cst = arith.constant dense<0xFF800000> : vector<8xf32>
    %1 = vector.multi_reduction <maximumf>, %0, %cst [1] : vector<8x33xf32> to vector<8xf32>
    %2 = vector.shape_cast %1 : vector<8xf32> to vector<8x1xf32>
    %3 = vector.broadcast %2 : vector<8x1xf32> to vector<8x33xf32>
    %4 = arith.subf %0, %3 : vector<8x33xf32>
    %5 = math.exp %4 : vector<8x33xf32>
    %cst_1 = arith.constant dense<0.000000e+00> : vector<8xf32>
    %6 = vector.multi_reduction <add>, %5, %cst_1 [1] : vector<8x33xf32> to vector<8xf32>
    %7 = vector.shape_cast %6 : vector<8xf32> to vector<8x1xf32>
    %8 = math.log %7 : vector<8x1xf32>
    %9 = arith.addf %8, %2 : vector<8x1xf32>
    %10 = vector.extract_strided_slice %0 {offsets = [0, 0], sizes = [8, 1], strides = [1, 1]} : vector<8x33xf32> to vector<8x1xf32>
    %11 = arith.subf %9, %10 : vector<8x1xf32>
    %c8_i32 = arith.constant 8 : i32
    %12 = arith.muli %arg0, %c8_i32 : i32
    %c8_i32_2 = arith.constant 8 : i32
    %13 = arith.subi %c8_i32_2, %12 : i32
    %14 = tpu.iota {dimensions = array<i32: 0>} : vector<8x1xi32>
    %15 = vector.broadcast %13 : i32 to vector<8x1xi32>
    %16 = arith.cmpi slt, %14, %15 : vector<8x1xi32>
    %cst_3 = arith.constant 0.000000e+00 : f32
    %17 = vector.broadcast %cst_3 : f32 to vector<8x1xf32>
    %18 = arith.select %16, %11, %17 : vector<8x1xi1>, vector<8x1xf32>
    %19 = vector.shape_cast %18 : vector<8x1xf32> to vector<1x8x1xf32>
    %cst_4 = arith.constant dense<0.000000e+00> : vector<1xf32>
    %20 = vector.multi_reduction <add>, %19, %cst_4 [1, 2] : vector<1x8x1xf32> to vector<1xf32>
    %21 = vector.shape_cast %20 : vector<1xf32> to vector<1x1x1xf32>
    %22 = vector.extract %21[0, 0, 0] : f32 from vector<1x1x1xf32>
    %23 = vector.broadcast %22 : f32 to vector<1x8x128xf32>
    %c0_5 = arith.constant 0 : index
    %c0_6 = arith.constant 0 : index
    %c0_7 = arith.constant 0 : index
    %24 = vector.load %arg2[%c0_5, %c0_6, %c0_7] : memref<1x8x128xf32, #tpu.memory_space<vmem>>, vector<1x8x128xf32>
    tpu.vector_store %arg2[%c0_5, %c0_6, %c0_7], %23 {strides = array<i32>} : memref<1x8x128xf32, #tpu.memory_space<vmem>>, vector<1x8x128xf32>,
    return
  }
  func.func @transform_0(%arg0: i32) -> (i32, i32) {
    %c0_i32 = arith.constant 0 : i32
    %c0_i32_0 = arith.constant 0 : i32
    return %arg0, %c0_i32 : i32, i32
  }
  func.func @transform_1(%arg0: i32) -> (i32, i32, i32) {
    %c0_i32 = arith.constant 0 : i32
    %c0_i32_0 = arith.constant 0 : i32
    %c0_i32_1 = arith.constant 0 : i32
    return %arg0, %c0_i32, %c0_i32_0 : i32, i32, i32
  }
}

</mosaic_0001>

<bundles_post_ra>
// kernel: tpu_custom_call.1
= control target key start
LH: loop header
LB: loop body
LE: loop exit
PB: predicated region body
PF: predicated region fallthrough
CT: control target
= control target key end

     0   :  { %6 = vsyncpa [#allocation3], 0  ;;  %s163_s0 = inlined_call_operand.hbm [shape: f32[8,33], index: 0, kind: input, shape index: {}]   ;;  %s164_s1 = inlined_call_operand.hbm [shape: f32[1,8,128], index: 1, kind: output, shape index: {}]  }
   0x1   :  { %7 = vsyncpa [#allocation4], 0  ;;  %s127_s6 = smov [#allocation2]   ;;  %s79_s10 = scalar_lea.hbm %s163_s0, 128 }
   0x2   :  { %s14_s7 = sshll.u32 %s127_s6, 4  ;;  %p80_p0 = scmp.ne.s32.totalorder %s163_s0, %s79_s10  ;;  %s15_s7 = int_to_ptr.vmem [resolvable:$true] %s14_s7 }
   0x3   :  { %p83_p1 = scmp.lt.u32.totalorder %s79_s10, %s163_s0 }
   0x5   :  { %p85_p2 = pnand %p83_p1, %p80_p0 }
   0x7   :  { %88 = shalt.err (!%p85_p2)
}
   0x8   :  { %s89_s15 = scalar_lea.vmem %s15_s7, 128  ;;  %p94_p4 = scmp.lt.s32.totalorder %s15_s7, %s15_s7 }
   0x9   :  { %p90_p3 = scmp.ne.s32.totalorder %s15_s7, %s89_s15  ;;  %p95_p5 = scmp.lt.s32.totalorder %s89_s15, %s89_s15 }
   0xb   :  { %p96_p6 = por %p95_p5, %p94_p4 }
   0xd   :  { %p97_p7 = pnand %p96_p6, %p90_p3 }
   0xf   :  { %100 = shalt.err (!%p97_p7)
}
  0x10   :  { %17 = dma.hbm_to_vmem [thread:$0]  %s163_s0, 128, %s15_s7, [#allocation3]  }
  0x11   :  { %123 = dma.done.wait [#allocation3], 128  }
  0x12   :  { %124 = vsyncadd [#allocation3], 4294967168  ;;  %vm22_vm0 = vcmask 269312   ;;  %v21_v0 = vld [vmem:[#allocation2] sm:$0xff]  ;;  %vm43_vm1 = vcmask 7168   ;;  %s128_s0 = smov [#allocation5]  }
  0x13   :  { %v23_v1 = vsel %vm22_vm0, %v21_v0, -inf  ;;  %s62_s18 = sshll.u32 %s128_s0, 4  ;;  %s63_s18 = int_to_ptr.vmem [resolvable:$true] %s62_s18 }
  0x14   :  { %24 = vmax.xlane.f32.xlu0 %v23_v1  ;;  %s101_s20 = scalar_lea.vmem %s63_s18, 128  ;;  %p106_p9 = scmp.lt.s32.totalorder %s63_s18, %s63_s18 }
  0x15   :  { %p102_p8 = scmp.ne.s32.totalorder %s63_s18, %s101_s20  ;;  %p107_p10 = scmp.lt.s32.totalorder %s101_s20, %s101_s20 }
  0x17   :  { %p108_p11 = por %p107_p10, %p106_p9 }
  0x19   :  { %p109_p12 = pnand %p108_p11, %p102_p8 }
  0xa1   :  { %v25_v2 = vpop.xlane.xlu0 %24 }
  0xa2   :  { %v26_v3 = vsub.f32 %v21_v0, %v25_v2 }
  0xa4   :  { %v27_v4 = vmul.f32 1.442695, %v26_v3 }
  0xa6   :  { %75 = vpow2.f32 %v27_v4 }
  0xb0   :  { %v76_v5 = vpop.eup %75 }
  0xb1   :  { %v29_v6 = vsel %vm22_vm0, %v76_v5, 0.0 }
  0xb2   :  { %30 = vadd.xlane.f32.xlu0 %v29_v6 }
 0x13f   :  { %v31_v7 = vpop.xlane.xlu0 %30 }
 0x140   :  { %77 = vlog2.f32 %v31_v7 }
 0x14a   :  { %v78_v8 = vpop.eup %77 }
 0x14b   :  { %v33_v9 = vmul.f32 0.6931472, %v78_v8 }
 0x14d   :  { %v34_v10 = vadd.f32 %v33_v9, %v25_v2 }
 0x14f   :  { %v35_v11 = vsub.f32 %v34_v10, %v21_v0 }
 0x151   :  { %v44_v12 = vsel %vm43_vm1, %v35_v11, 0.0 }
 0x152   :  { %45 = vadd.xlane.f32.xlu1 %v44_v12 }
 0x1df   :  { %v46_v13 = vpop.xlane.xlu1 %45 }
 0x1e0   :  { %v47_v14 = vrot.slane %v46_v13, 4 }
 0x1e2   :  { %v48_v15 = vadd.f32 %v47_v14, %v46_v13 }
 0x1e4   :  { %v49_v16 = vrot.slane %v48_v15, 2 }
 0x1e6   :  { %v50_v17 = vadd.f32 %v49_v16, %v48_v15 }
 0x1e8   :  { %v51_v18 = vrot.slane %v50_v17, 1 }
 0x1ea   :  { %v52_v19 = vadd.f32 %v51_v18, %v50_v17 }
 0x1ec   :  { %71 = vpush %v52_v19 }
 0x21d   :  { %s72_s19 = spop %71 }
 0x21e   :  { %v54_v20 = vstv %s72_s19 }
 0x21f   :  { %55 = vst [vmem:[#allocation5] sm:$0xff] %v54_v20 }
 0x220   :  { %112 = shalt.err (!%p109_p12)
}
 0x221   :  { %s113_s23 = scalar_lea.hbm %s164_s1, 128 }
 0x222   :  { %p114_p13 = scmp.ne.s32.totalorder %s164_s1, %s113_s23  ;;  %p117_p0 = scmp.lt.u32.totalorder %s113_s23, %s164_s1 }
 0x224   :  { %p119_p1 = pnand %p117_p0, %p114_p13 }
 0x226   :  { %122 = shalt.err (!%p119_p1)
}
 0x227   :  { %65 = dma.vmem_to_hbm [thread:$0]  %s63_s18, 128, %s164_s1, [#allocation4]  }
 0x228   :  { %125 = dma.done.wait [#allocation4], 128  }
 0x229   :  { %126 = vsyncadd [#allocation4], 4294967168 }
 0x22a   :  { %69 = vsyncpa [#allocation3], 1 }
 0x22b   :  { %70 = vsyncpa [#allocation4], 1 }

</bundles_post_ra>
